<compile_context>
chip_gen: v6e
topology: v6e:2x2x1
jax: 0.10.0
libtpu: 0.0.40
codegen_flags: <defaults>
</compile_context>

<pallas_src>
import functools
import math

import jax
import jax.numpy as jnp
from jax.experimental import pallas as pl
from jax.experimental.pallas import tpu as pltpu


def _round_up(v, m):
    return ((v + m - 1) // m) * m


def _cdiv(a, b):
    return -(-a // b)


def _vmem_capacity_bytes():
    """Physical VMEM per TensorCore (v5e/v6e 128 MiB, v7x 64 MiB)."""
    try:
        info = pltpu.get_tpu_info()
        for attr in ("vmem_capacity_bytes", "vmem_bytes"):
            v = getattr(info, attr, None)
            if v:
                return int(v)
    except Exception:
        pass
    return 64 << 20   # conservative fallback = v7x per-TC VMEM


# --------------------------------- kernels -----------------------------------

def _fused_kernel(x_ref, w_ref, mask_ref, bias_ref, o_ref):
    """Single-K-block path: whole IN dim in one tile, no accumulator scratch.

    out[b, o] = mask[b, o] * (x @ W.T)[b, o] + bias[o]
    W is pre-transposed to (IN, OUT), so the dot is canonical (M,K) x (K,N).
    """
    acc = jnp.dot(x_ref[...], w_ref[...], preferred_element_type=jnp.float32)
    o_ref[...] = (acc * mask_ref[...].astype(jnp.float32)
                  + bias_ref[...].astype(jnp.float32)).astype(o_ref.dtype)


def _splitk_kernel(x_ref, w_ref, mask_ref, bias_ref, o_ref, acc_ref):
    """K-split path (very large IN): accumulate over the K grid axis in f32."""
    k = pl.program_id(2)
    partial = jnp.dot(x_ref[...], w_ref[...], preferred_element_type=jnp.float32)

    @pl.when(k == 0)
    def _():                       # first K step: write directly, no zero-fill
        acc_ref[...] = partial

    @pl.when(k != 0)
    def _():
        acc_ref[...] += partial

    @pl.when(k == pl.num_programs(2) - 1)
    def _():
        o_ref[...] = (acc_ref[...] * mask_ref[...].astype(jnp.float32)
                      + bias_ref[...].astype(jnp.float32)).astype(o_ref.dtype)


# --------------------------------- wrapper -----------------------------------

def make_linear_sparse(weight, bias=None, *, compute_dtype=jnp.bfloat16,
                       tm=None, tn=None, tk=None):
    """One-time weight preparation; returns a jitted apply(x, mask) -> (B, OUT).

    out[b, o] = mask[b, o] * (x @ W.T)[b, o] + bias[o]

    Note: the mask is streamed in `compute_dtype`; 0/1 masks are exact in bf16.
    Pass compute_dtype=jnp.float32 for full-precision parity / arbitrary masks.
    """
    OUT, IN = weight.shape
    if bias is None:
        bias = jnp.zeros((OUT,), jnp.float32)
    assert bias.shape == (OUT,)

    capacity = _vmem_capacity_bytes()
    budget = int(capacity * 0.70)            # tile-fit budget (double-buffered)
    cds = jnp.dtype(compute_dtype).itemsize
    mb = cds                                 # mask streamed at compute dtype
    ob = 4                                   # budget assumes f32 output (worst)

    # ---- tile selection ------------------------------------------------------
    tm_cap = 512 if tm is None else int(tm)
    if tn is None:
        tn_sel = min(_round_up(OUT, 128), 1024)
        # Shrink tn while it would force > 25% wasted OUT padding.
        while (tn_sel % 256 == 0
               and (_round_up(OUT, tn_sel) - OUT) * 4 > _round_up(OUT, tn_sel)):
            tn_sel //= 2
    else:
        tn_sel = _round_up(int(tn), 128)
    INp_min = _round_up(IN, 128)

    def _ws_fused(tm_, tn_):                 # single-K working set, double-buffered
        return (2 * (tm_ + tn_) * INp_min * cds
                + 2 * tm_ * tn_ * (mb + ob) + 2 * tn_ * 4)

    if tk is None:
        # Prefer one K block: W is DMA'd once (never re-streamed over the B
        # loop) and no accumulator scratch / extra VMEM round trips are needed.
        while _ws_fused(tm_cap, tn_sel) > budget and tn_sel % 256 == 0:
            tn_sel //= 2
        if _ws_fused(tm_cap, tn_sel) <= budget:
            tk_sel = INp_min
        else:
            fixed = (2 * tm_cap * tn_sel * (mb + ob) + 2 * tn_sel * 4
                     + tm_cap * tn_sel * 4)
            tk_sel = (budget - fixed) // (2 * (tm_cap + tn_sel) * cds)
            tk_sel = max(128, (tk_sel // 128) * 128)
            tk_sel = min(tk_sel, INp_min)
    else:
        tk_sel = min(_round_up(int(tk), 128), INp_min)

    INp = _round_up(IN, tk_sel)
    OUTp = _round_up(OUT, tn_sel)

    # ---- one-time weight/bias preparation (no per-call HBM passes over W) ---
    w_t = weight
    if w_t.dtype != compute_dtype:
        w_t = w_t.astype(compute_dtype)
    w_t = w_t.T                                            # (IN, OUT)
    if (INp, OUTp) != (IN, OUT):
        w_t = jnp.pad(w_t, ((0, INp - IN), (0, OUTp - OUT)))
    bias_p = bias.astype(jnp.float32)
    if OUTp != OUT:
        bias_p = jnp.pad(bias_p, (0, OUTp - OUT))
    bias_p = bias_p.reshape(1, OUTp)

    def _apply(x, mask, w_prep, bias_prep):
        B, IN_ = x.shape
        assert IN_ == IN and mask.shape == (B, OUT)
        out_dtype = x.dtype

        # Sublane multiple from the narrowest dtype sharing a (tm, *) block.
        min_item = min(cds, jnp.dtype(out_dtype).itemsize)
        sub = 32 // min_item
        tm_ = min(_round_up(B, sub), _round_up(tm_cap, sub))
        Bp = _round_up(B, tm_)

        # Keep both v7x TensorCores busy when B and OUT would fit one tile.
        tn_ = tn_sel
        while _cdiv(Bp, tm_) * (OUTp // tn_) < 2 and tn_ % 256 == 0:
            tn_ //= 2

        # Pad/cast only the (small) activation and mask; W is already prepared.
        x_p = x if x.dtype == compute_dtype else x.astype(compute_dtype)
        if (Bp, INp) != (B, IN):
            x_p = jnp.pad(x_p, ((0, Bp - B), (0, INp - IN)))
        m_p = mask if mask.dtype == compute_dtype else mask.astype(compute_dtype)
        if (Bp, OUTp) != (B, OUT):
            m_p = jnp.pad(m_p, ((0, Bp - B), (0, OUTp - OUT)))

        n_j, n_i, n_k = OUTp // tn_, Bp // tm_, INp // tk_sel
        out_b = jnp.dtype(out_dtype).itemsize
        mask_b = jnp.dtype(m_p.dtype).itemsize

        if n_k == 1:
            ws = (2 * (tm_ + tn_) * INp * cds
                  + 2 * tm_ * tn_ * (mask_b + out_b) + 2 * tn_ * 4)
        else:
            ws = (2 * (tm_ * tk_sel + tk_sel * tn_) * cds
                  + 2 * tm_ * tn_ * (mask_b + out_b) + 2 * tn_ * 4
                  + tm_ * tn_ * 4)
        vmem_limit = min(max(int(ws * 1.5) + (2 << 20), 16 << 20),
                         int(capacity * 0.85))

        cost = pl.CostEstimate(
            flops=2 * Bp * OUTp * INp,
            transcendentals=0,
            bytes_accessed=int(
                INp * OUTp * cds * (1 if n_k == 1 else n_i)   # W stream
                + Bp * INp * cds * n_j                        # x per OUT tile
                + Bp * OUTp * (mask_b + out_b)
                + OUTp * 4),
        )

        if n_k == 1:
            out_p = pl.pallas_call(
                _fused_kernel,
                out_shape=jax.ShapeDtypeStruct((Bp, OUTp), out_dtype),
                grid_spec=pltpu.PrefetchScalarGridSpec(
                    num_scalar_prefetch=0,
                    grid=(n_j, n_i),
                    in_specs=[
                        pl.BlockSpec((tm_, INp), lambda j, i: (i, 0)),   # x
                        pl.BlockSpec((INp, tn_), lambda j, i: (0, j)),   # W^T (const over i)
                        pl.BlockSpec((tm_, tn_), lambda j, i: (i, j)),   # mask
                        pl.BlockSpec((1, tn_), lambda j, i: (0, j)),     # bias
                    ],
                    out_specs=pl.BlockSpec((tm_, tn_), lambda j, i: (i, j)),
                ),
                compiler_params=pltpu.CompilerParams(
                    dimension_semantics=("parallel", "parallel"),
                    vmem_limit_bytes=vmem_limit,
                ),
                cost_estimate=cost,
            )(x_p, w_prep, m_p, bias_prep)
        else:
            out_p = pl.pallas_call(
                _splitk_kernel,
                out_shape=jax.ShapeDtypeStruct((Bp, OUTp), out_dtype),
                grid_spec=pltpu.PrefetchScalarGridSpec(
                    num_scalar_prefetch=0,
                    grid=(n_j, n_i, n_k),
                    in_specs=[
                        pl.BlockSpec((tm_, tk_sel), lambda j, i, k: (i, k)),
                        pl.BlockSpec((tk_sel, tn_), lambda j, i, k: (k, j)),
                        pl.BlockSpec((tm_, tn_), lambda j, i, k: (i, j)),
                        pl.BlockSpec((1, tn_), lambda j, i, k: (0, j)),
                    ],
                    out_specs=pl.BlockSpec((tm_, tn_), lambda j, i, k: (i, j)),
                    scratch_shapes=[pltpu.VMEM((tm_, tn_), jnp.float32)],
                ),
                compiler_params=pltpu.CompilerParams(
                    dimension_semantics=("parallel", "parallel", "arbitrary"),
                    vmem_limit_bytes=vmem_limit,
                ),
                cost_estimate=cost,
            )(x_p, w_prep, m_p, bias_prep)

        return out_p[:B, :OUT]

    apply_jit = jax.jit(_apply)

    def apply(x, mask):
        return apply_jit(x, mask, w_t, bias_p)

    return apply


def linear_sparse(x, weight, mask, bias=None, **kwargs):
    """One-shot convenience (re-prepares W each call; prefer make_linear_sparse)."""
    return make_linear_sparse(weight, bias, **kwargs)(x, mask)


# ----------------------------------- demo ------------------------------------

if __name__ == "__main__":
    B, IN, OUT = 8, 32, 64

    key = jax.random.PRNGKey(0)
    kx, kw, kb, km = jax.random.split(key, 4)

    # Mirror nn.init.uniform_(-k, k), k = sqrt(1/in_features)
    k = math.sqrt(1.0 / IN)
    weight = jax.random.uniform(kw, (OUT, IN), jnp.float32, minval=-k, maxval=k)
    bias = jax.random.uniform(kb, (OUT,), jnp.float32, minval=-k, maxval=k)
    x = jax.random.normal(kx, (B, IN), jnp.float32)
    mask = jax.random.bernoulli(km, 0.5, (B, OUT)).astype(jnp.float32)

    # Pure-JAX reference replicating the PyTorch broadcasting exactly (f32).
    w_eff = weight[None, :, :] * mask[:, :, None]            # (B, OUT, IN)
    ref = (x[:, None, :] * w_eff).sum(-1) + bias[None, :]    # (B, OUT)

    # Exact path: f32 operands + f32 accumulation, tight tolerance.
    apply_f32 = make_linear_sparse(weight, bias, compute_dtype=jnp.float32)
    out_f32 = jax.block_until_ready(apply_f32(x, mask))
    assert out_f32.shape == (B, OUT)
    assert jnp.allclose(out_f32, ref, atol=1e-5, rtol=1e-5), "f32 mismatch vs reference"

    # Fast path (default): cached bf16 W^T, bf16 x/mask streams, f32 accumulation.
    apply_bf16 = make_linear_sparse(weight, bias)
    out_bf16 = jax.block_until_ready(apply_bf16(x, mask))
    assert out_bf16.shape == (B, OUT)
    assert jnp.allclose(out_bf16, ref, atol=3e-2, rtol=3e-2), "bf16 mismatch vs reference"

    print("KERNEL_OK")
</pallas_src>

<mosaic_0001>
module attributes {stable_mosaic.version = 11 : i64} {
  func.func @_fused_kernel(%arg0: i32, %arg1: i32, %arg2: memref<8x128xf32, #tpu.memory_space<vmem>>, %arg3: memref<128x128xf32, #tpu.memory_space<vmem>>, %arg4: memref<8x128xf32, #tpu.memory_space<vmem>>, %arg5: memref<1x128xf32, #tpu.memory_space<vmem>>, %arg6: memref<8x128xf32, #tpu.memory_space<vmem>>) attributes {dimension_semantics = [#tpu.dimension_semantics<parallel>, #tpu.dimension_semantics<parallel>], iteration_bounds = array<i64: 1, 1>, scalar_prefetch = 0 : i64, scratch_operands = 0 : i64, tpu.core_type = #tpu.core_type<tc>, window_params = [{transform_indices = @transform_0, window_bounds = array<i64: 8, 128>}, {transform_indices = @transform_1, window_bounds = array<i64: 128, 128>}, {transform_indices = @transform_2, window_bounds = array<i64: 8, 128>}, {transform_indices = @transform_3, window_bounds = array<i64: 1, 128>}, {transform_indices = @transform_4, window_bounds = array<i64: 8, 128>}]} {
    %c0 = arith.constant 0 : index
    %c0_0 = arith.constant 0 : index
    %0 = vector.load %arg2[%c0, %c0_0] : memref<8x128xf32, #tpu.memory_space<vmem>>, vector<8x128xf32>
    %c0_1 = arith.constant 0 : index
    %c0_2 = arith.constant 0 : index
    %1 = vector.load %arg3[%c0_1, %c0_2] : memref<128x128xf32, #tpu.memory_space<vmem>>, vector<128x128xf32>
    %cst = arith.constant dense<0.000000e+00> : vector<8x128xf32>
    %2 = tpu.matmul %0, %1, %cst {dimension_numbers = #tpu.dot_dimension_numbers<[1], [0], [0], [1], [0, 0, 1, 1], [], []>} : vector<8x128xf32>, vector<128x128xf32>, vector<8x128xf32> -> vector<8x128xf32>
    %c0_3 = arith.constant 0 : index
    %c0_4 = arith.constant 0 : index
    %3 = vector.load %arg4[%c0_3, %c0_4] : memref<8x128xf32, #tpu.memory_space<vmem>>, vector<8x128xf32>
    %4 = arith.mulf %2, %3 : vector<8x128xf32>
    %c0_5 = arith.constant 0 : index
    %c0_6 = arith.constant 0 : index
    %5 = vector.load %arg5[%c0_5, %c0_6] : memref<1x128xf32, #tpu.memory_space<vmem>>, vector<1x128xf32>
    %6 = vector.broadcast %5 : vector<1x128xf32> to vector<8x128xf32>
    %7 = arith.addf %4, %6 : vector<8x128xf32>
    %c0_7 = arith.constant 0 : index
    %c0_8 = arith.constant 0 : index
    %8 = vector.load %arg6[%c0_7, %c0_8] : memref<8x128xf32, #tpu.memory_space<vmem>>, vector<8x128xf32>
    tpu.vector_store %arg6[%c0_7, %c0_8], %7 {strides = array<i32>} : memref<8x128xf32, #tpu.memory_space<vmem>>, vector<8x128xf32>,
    return
  }
  func.func @transform_0(%arg0: i32, %arg1: i32) -> (i32, i32) {
    %c0_i32 = arith.constant 0 : i32
    %c0_i32_0 = arith.constant 0 : i32
    return %arg1, %c0_i32 : i32, i32
  }
  func.func @transform_1(%arg0: i32, %arg1: i32) -> (i32, i32) {
    %c0_i32 = arith.constant 0 : i32
    %c0_i32_0 = arith.constant 0 : i32
    return %c0_i32, %arg0 : i32, i32
  }
  func.func @transform_2(%arg0: i32, %arg1: i32) -> (i32, i32) {
    %c0_i32 = arith.constant 0 : i32
    return %arg1, %arg0 : i32, i32
  }
  func.func @transform_3(%arg0: i32, %arg1: i32) -> (i32, i32) {
    %c0_i32 = arith.constant 0 : i32
    %c0_i32_0 = arith.constant 0 : i32
    return %c0_i32, %arg0 : i32, i32
  }
  func.func @transform_4(%arg0: i32, %arg1: i32) -> (i32, i32) {
    %c0_i32 = arith.constant 0 : i32
    return %arg1, %arg0 : i32, i32
  }
}

</mosaic_0001>

<bundles_post_ra>
// kernel: _apply.1
= control target key start
LH: loop header
LB: loop body
LE: loop exit
PB: predicated region body
PF: predicated region fallthrough
CT: control target
= control target key end

     0   :  { %9 = vsyncpa [#allocation3], 0  ;;  %s294_s0 = inlined_call_operand.vmem [shape: f32[8,128], index: 0, kind: input, shape index: {}]   ;;  %s295_s1 = inlined_call_operand.hbm [shape: f32[128,128], index: 1, kind: input, shape index: {}]   ;;  %s296_s2 = inlined_call_operand.vmem [shape: f32[8,128], index: 2, kind: input, shape index: {}]   ;;  %s297_s3 = inlined_call_operand.vmem [shape: f32[1,128], index: 3, kind: input, shape index: {}]   ;;  %s298_s4 = inlined_call_operand.hbm [shape: f32[8,128], index: 4, kind: output, shape index: {}]  }
   0x1   :  { %10 = vsyncpa [#allocation4], 0  ;;  %s248_s15 = smov [#allocation2]  }
   0x2   :  { %s18_s16 = sshll.u32 %s248_s15, 4  ;;  %s19_s16 = int_to_ptr.vmem [resolvable:$true] %s18_s16 }
   0x3   :  { %s212_s17 = scalar_lea.vmem %s19_s16, 2048  ;;  %p217_p1 = scmp.lt.s32.totalorder %s19_s16, %s19_s16 }
   0x4   :  { %p213_p0 = scmp.ne.s32.totalorder %s19_s16, %s212_s17  ;;  %p218_p2 = scmp.lt.s32.totalorder %s212_s17, %s212_s17 }
   0x6   :  { %p219_p3 = por %p218_p2, %p217_p1 }
   0x8   :  { %p220_p4 = pnand %p219_p3, %p213_p0 }
   0xa   :  { %223 = shalt.err (!%p220_p4)
}
   0xb   :  { %s249_s18 = smov 128   ;;  %s250_s19 = smov 8  }
   0xc   :  { %24 = dma.hbm_to_vmem [thread:$0]  %s295_s1, 2048, %s19_s16, [#allocation3], %s249_s18, %s249_s18, %s250_s19  }
   0xd   :  { %244 = dma.done.wait [#allocation3], 2048  }
   0xe   :  { %245 = vsyncadd [#allocation3], 4294965248  ;;  %v251_v0 = vmov 0.0   ;;  %vm252_vm0 = vmmov 0   ;;  %v48_v1 = vld [vmem:[#allocation2 + $0x78] sm:$0xff]  ;;  %v47_v2 = vld [vmem:[#allocation2 + $0x70] sm:$0xff] }
   0xf   :  { %163 = vmatprep.subr.mxu0 %v251_v0  ;;  %195 = vmatprep.mubr.msk.f32.mxu0 %vm252_vm0, %v251_v0  ;;  %v46_v3 = vld [vmem:[#allocation2 + $0x68] sm:$0xff]  ;;  %v45_v4 = vld [vmem:[#allocation2 + $0x60] sm:$0xff]  ;;  %v44_v5 = vld [vmem:[#allocation2 + $0x58] sm:$0xff]  ;;  %s253_s27 = smov [#allocation5]  }
  0x10   :  { %164 = vmatpush3.msra.mxu0 %v48_v1  ;;  %v43_v6 = vld [vmem:[#allocation2 + $0x50] sm:$0xff]  ;;  %v42_v7 = vld [vmem:[#allocation2 + $0x48] sm:$0xff]  ;;  %v41_v8 = vld [vmem:[#allocation2 + $0x40] sm:$0xff]  ;;  %s136_s28 = sshll.u32 %s253_s27, 4  ;;  %s137_s28 = int_to_ptr.vmem [resolvable:$true] %s136_s28 }
  0x11   :  { %165 = vmatprep.subr.mxu0 %v251_v0  ;;  %v40_v9 = vld [vmem:[#allocation2 + $0x38] sm:$0xff]  ;;  %v39_v10 = vld [vmem:[#allocation2 + $0x30] sm:$0xff]  ;;  %v38_v11 = vld [vmem:[#allocation2 + $0x28] sm:$0xff]  ;;  %p229_p6 = scmp.lt.s32.totalorder %s137_s28, %s137_s28 }
  0x12   :  { %166 = vmatpush3.msra.mxu0 %v47_v2  ;;  %v37_v12 = vld [vmem:[#allocation2 + $0x20] sm:$0xff]  ;;  %v36_v13 = vld [vmem:[#allocation2 + $0x18] sm:$0xff]  ;;  %v35_v14 = vld [vmem:[#allocation2 + $0x10] sm:$0xff] }
  0x13   :  { %167 = vmatprep.subr.mxu0 %v251_v0  ;;  %v34_v15 = vld [vmem:[#allocation2 + $0x8] sm:$0xff]  ;;  %v33_v16 = vld [vmem:[#allocation2] sm:$0xff] }
  0x14   :  { %168 = vmatpush3.msra.mxu0 %v46_v3  ;;  %v32_v17 = vld [vmem:[%s294_s0] sm:$0xff]  ;;  %s224_s0 = scalar_lea.vmem %s137_s28, 128 }
  0x15   :  { %169 = vmatprep.subr.mxu0 %v251_v0  ;;  %v119_v18 = vld [vmem:[%s296_s2] sm:$0xff]  ;;  %p225_p5 = scmp.ne.s32.totalorder %s137_s28, %s224_s0  ;;  %p230_p7 = scmp.lt.s32.totalorder %s224_s0, %s224_s0 }
  0x16   :  { %170 = vmatpush3.msra.mxu0 %v45_v4  ;;  %v145_v20 = vld [vmem:[%s297_s3] ss:$0 sm:$0xff] }
  0x17   :  { %171 = vmatprep.subr.mxu0 %v251_v0  ;;  %p231_p8 = por %p230_p7, %p229_p6 }
  0x18   :  { %172 = vmatpush3.msra.mxu0 %v44_v5 }
  0x19   :  { %173 = vmatprep.subr.mxu0 %v251_v0  ;;  %p232_p9 = pnand %p231_p8, %p225_p5 }
  0x1a   :  { %174 = vmatpush3.msra.mxu0 %v43_v6 }
  0x1b   :  { %175 = vmatprep.subr.mxu0 %v251_v0 }
  0x1c   :  { %176 = vmatpush3.msra.mxu0 %v42_v7 }
  0x1d   :  { %177 = vmatprep.subr.mxu0 %v251_v0 }
  0x1e   :  { %178 = vmatpush3.msra.mxu0 %v41_v8 }
  0x1f   :  { %179 = vmatprep.subr.mxu0 %v251_v0 }
  0x20   :  { %180 = vmatpush3.msra.mxu0 %v40_v9 }
  0x21   :  { %181 = vmatprep.subr.mxu0 %v251_v0 }
  0x22   :  { %182 = vmatpush3.msra.mxu0 %v39_v10 }
  0x23   :  { %183 = vmatprep.subr.mxu0 %v251_v0 }
  0x24   :  { %184 = vmatpush3.msra.mxu0 %v38_v11 }
  0x25   :  { %185 = vmatprep.subr.mxu0 %v251_v0 }
  0x26   :  { %186 = vmatpush3.msra.mxu0 %v37_v12 }
  0x27   :  { %187 = vmatprep.subr.mxu0 %v251_v0 }
  0x28   :  { %188 = vmatpush3.msra.mxu0 %v36_v13 }
  0x29   :  { %189 = vmatprep.subr.mxu0 %v251_v0 }
  0x2a   :  { %190 = vmatpush3.msra.mxu0 %v35_v14 }
  0x2b   :  { %191 = vmatprep.subr.mxu0 %v251_v0 }
  0x2c   :  { %192 = vmatpush3.msra.mxu0 %v34_v15 }
  0x2d   :  { %193 = vmatprep.subr.mxu0 %v251_v0 }
  0x2e   :  { %194 = vmatpush3.msra.mxu0 %v33_v16 }
  0x2f   :  { %196 = vmatmul.mubr.f32.vlgmr.msra.gmra.mxu0 %v32_v17 }
  0xef   :  { %v115_v19 = vpop.f32.mrf.mxu0 }
  0xf0   :  { %v120_v21 = vmul.f32 %v119_v18, %v115_v19 }
  0xf1   :  { %v197_v22 = vpop.f32.mrf.mxu0 }
  0xf2   :  { %v128_v23 = vadd.f32 %v145_v20, %v120_v21 }
  0xf4   :  { %129 = vst [vmem:[#allocation5] sm:$0xff] %v128_v23 }
  0xf5   :  { %235 = shalt.err (!%p232_p9)
}
  0xf6   :  { %139 = dma.vmem_to_hbm [thread:$0]  %s137_s28, 128, %s298_s4, [#allocation4]  }
  0xf7   :  { %246 = dma.done.wait [#allocation4], 128  }
  0xf8   :  { %247 = vsyncadd [#allocation4], 4294967168 }
  0xf9   :  { %143 = vsyncpa [#allocation3], 1 }
  0xfa   :  { %144 = vsyncpa [#allocation4], 1 }

</bundles_post_ra>
